<compile_context>
chip_gen: v5e
topology: v5e:2x2
jax: 0.10.0
libtpu: 0.0.40
codegen_flags: <defaults>
</compile_context>

<pallas_src>
import functools

import jax
import jax.numpy as jnp
import numpy as np
from jax import lax
from jax.experimental import pallas as pl
from jax.experimental.pallas import tpu as pltpu  # noqa: F401  (kept for TPU backend)


# ----------------------------------------------------------------------------
# Fused Pallas kernel: gat2( elu( gat1(x) ) )   — whole graph resident in VMEM
# ----------------------------------------------------------------------------
def _proto_graph_kernel(x_ref, mask_ref, w1_ref, asrc1_ref, adst1_ref, b1_ref,
                        w2_ref, asrc2_ref, adst2_ref, b2_ref, out_ref,
                        *, heads: int, latent_dim: int):
    x = x_ref[...]                                   # [N, Fin]
    mask = mask_ref[...]                             # [N, N] additive (0 / -1e30)
    w2 = w2_ref[...]                                 # [H*L, F]
    asrc1 = asrc1_ref[...]                           # [H, L]
    adst1 = adst1_ref[...]                           # [H, L]
    b1 = b1_ref[...]                                 # [H, L]

    N = x.shape[0]
    feat_dim = w2.shape[1]

    # ---- layer 1: one projection matmul for ALL heads (MXU) ----------------
    xw = jnp.dot(x, w1_ref[...], preferred_element_type=jnp.float32)  # [N, H*L]

    # Accumulate the layer-2 projection directly from per-head outputs:
    #   elu(concat_h(out_h) + b1) @ W2 == sum_h elu(out_h + b1_h) @ W2[hL:(h+1)L]
    xw2 = jnp.zeros((N, feat_dim), jnp.float32)

    for h in range(heads):                           # unrolled at trace time
        lo = h * latent_dim
        xw_h = xw[:, lo:lo + latent_dim]             # [N, L]
        a_dst = jnp.sum(xw_h * adst1[h:h + 1, :], axis=-1, keepdims=True)  # [N,1]
        # [1,L] . [N,L] contracting on features -> [1,N]; no transpose needed.
        a_src = lax.dot_general(asrc1[h:h + 1, :], xw_h,
                                (((1,), (1,)), ((), ())),
                                preferred_element_type=jnp.float32)        # [1,N]
        e = a_dst + a_src                            # [N, N]
        e = jnp.where(e > 0, e, 0.2 * e)             # LeakyReLU(0.2)
        e = e + mask                                 # mask non-edges
        e = e - jnp.max(e, axis=-1, keepdims=True)
        p = jnp.exp(e)
        inv = pl.reciprocal(jnp.sum(p, axis=-1, keepdims=True), approx=True)
        attn = p * inv                               # [N, N]

        agg = jnp.dot(attn, xw_h, preferred_element_type=jnp.float32)      # [N,L]
        act = agg + b1[h:h + 1, :]
        # ELU (alpha=1); min() keeps exp() finite in the untaken branch.
        act = jnp.where(act > 0, act, jnp.exp(jnp.minimum(act, 0.0)) - 1.0)
        xw2 = xw2 + jnp.dot(act, w2[lo:lo + latent_dim, :],
                            preferred_element_type=jnp.float32)            # [N,F]

    # ---- layer 2: single-head attention on the projected features ----------
    a_dst2 = jnp.sum(xw2 * adst2_ref[...], axis=-1, keepdims=True)         # [N,1]
    a_src2 = lax.dot_general(asrc2_ref[...], xw2, (((1,), (1,)), ((), ())),
                             preferred_element_type=jnp.float32)           # [1,N]
    e2 = a_dst2 + a_src2
    e2 = jnp.where(e2 > 0, e2, 0.2 * e2)
    e2 = e2 + mask
    e2 = e2 - jnp.max(e2, axis=-1, keepdims=True)
    p2 = jnp.exp(e2)
    inv2 = pl.reciprocal(jnp.sum(p2, axis=-1, keepdims=True), approx=True)
    attn2 = p2 * inv2

    out_ref[...] = (jnp.dot(attn2, xw2, preferred_element_type=jnp.float32)
                    + b2_ref[...])


# ----------------------------------------------------------------------------
# Wrapper: whole ProtoGraph forward in one pallas_call (no grid; all VMEM)
# ----------------------------------------------------------------------------
def proto_graph_forward(x, adj, params, *, num_heads, latent_dim, feat_dim):
    N = x.shape[0]
    # additive attention mask: 0 on edges / self-loops, -1e30 elsewhere (f32!)
    mask_bias = jnp.where(adj > 0, 0.0, -1e30).astype(jnp.float32)

    kernel = functools.partial(_proto_graph_kernel,
                               heads=num_heads, latent_dim=latent_dim)

    # No grid, no BlockSpecs: every operand is a full-array VMEM block and the
    # only output is the lane-dense [N, feat_dim] result.
    return pl.pallas_call(
        kernel,
        out_shape=jax.ShapeDtypeStruct((N, feat_dim), jnp.float32),
    )(x, mask_bias,
      params["W1"],
      params["asrc1"].reshape(num_heads, latent_dim),
      params["adst1"].reshape(num_heads, latent_dim),
      params["b1"].reshape(num_heads, latent_dim),
      params["W2"],
      params["asrc2"].reshape(1, feat_dim),
      params["adst2"].reshape(1, feat_dim),
      params["b2"].reshape(1, feat_dim))
    # TODO(synk): if N grows beyond a few hundred, replace the dense [N,N]
    # buffers with dst-row tiling + flash-style online softmax (VMEM bound).


# ----------------------------------------------------------------------------
# Pure-JAX reference (for correctness check)
# ----------------------------------------------------------------------------
def gat_ref(x, adj, W, a_s, a_d, b, *, heads, out_ch, apply_elu):
    N = x.shape[0]
    xw = (x @ W).reshape(N, heads, out_ch)                        # [N, H, F]
    asrc = jnp.sum(xw * a_s.reshape(1, heads, out_ch), axis=-1)   # [N, H]
    adst = jnp.sum(xw * a_d.reshape(1, heads, out_ch), axis=-1)   # [N, H]
    e = adst[:, None, :] + asrc[None, :, :]                       # [Nd, Ns, H]
    e = jnp.where(e > 0, e, 0.2 * e)
    e = jnp.where(adj[:, :, None] > 0, e, -1e30)
    attn = jax.nn.softmax(e, axis=1)
    out = jnp.einsum('ijh,jhf->ihf', attn, xw).reshape(N, heads * out_ch) + b
    if apply_elu:
        out = jax.nn.elu(out)
    return out


def proto_graph_ref(x, adj, params, *, num_heads, latent_dim, feat_dim):
    h = gat_ref(x, adj, params["W1"], params["asrc1"], params["adst1"],
                params["b1"], heads=num_heads, out_ch=latent_dim,
                apply_elu=True)
    return gat_ref(h, adj, params["W2"], params["asrc2"], params["adst2"],
                   params["b2"], heads=1, out_ch=feat_dim, apply_elu=False)


# ----------------------------------------------------------------------------
if __name__ == "__main__":
    # small config consistent with the module: embedding_dim / num_heads / latent_dim
    N = 16            # number of graph nodes
    feat_dim = 32     # embedding_dim
    num_heads = 4
    latent_dim = 8

    key = jax.random.PRNGKey(0)
    keys = jax.random.split(key, 10)

    # node features
    x = jax.random.normal(keys[0], (N, feat_dim), dtype=jnp.float32)

    # edge_index: ring graph + some random edges (src row 0, dst row 1)
    n_extra = 24
    ring_src = jnp.arange(N, dtype=jnp.int32)
    ring_dst = (ring_src + 1) % N
    extra_src = jax.random.randint(keys[1], (n_extra,), 0, N, dtype=jnp.int32)
    extra_dst = jax.random.randint(keys[2], (n_extra,), 0, N, dtype=jnp.int32)
    edge_index = jnp.stack([jnp.concatenate([ring_src, extra_src]),
                            jnp.concatenate([ring_dst, extra_dst])], axis=0)

    # dense adjacency mask [dst, src] with self-loops (GATConv add_self_loops=True)
    # TODO(synk): duplicate edges in edge_index collapse to one entry here,
    # whereas PyG softmaxes duplicates separately (reference shares this).
    adj = jnp.zeros((N, N), jnp.float32).at[edge_index[1], edge_index[0]].set(1.0)
    adj = adj.at[jnp.arange(N), jnp.arange(N)].set(1.0)

    # deterministic synthetic parameters (shapes match GATConv internals)
    def glorot(k, shape):
        fan = shape[0] + shape[-1]
        return jax.random.normal(k, shape, jnp.float32) * jnp.sqrt(2.0 / fan)

    params = {
        # gat1: GATConv(feat_dim, latent_dim, heads=num_heads)
        "W1": glorot(keys[3], (feat_dim, num_heads * latent_dim)),
        "asrc1": 0.1 * jax.random.normal(keys[4], (num_heads * latent_dim,), jnp.float32),
        "adst1": 0.1 * jax.random.normal(keys[5], (num_heads * latent_dim,), jnp.float32),
        "b1": 0.05 * jax.random.normal(keys[6], (num_heads * latent_dim,), jnp.float32),
        # gat2: GATConv(latent_dim * num_heads, feat_dim, heads=1)
        "W2": glorot(keys[7], (num_heads * latent_dim, feat_dim)),
        "asrc2": 0.1 * jax.random.normal(keys[8], (feat_dim,), jnp.float32),
        "adst2": 0.1 * jax.random.normal(keys[9], (feat_dim,), jnp.float32),
        "b2": jnp.zeros((feat_dim,), jnp.float32),
    }

    out = proto_graph_forward(x, adj, params, num_heads=num_heads,
                              latent_dim=latent_dim, feat_dim=feat_dim)
    out = jax.block_until_ready(out)

    ref = proto_graph_ref(x, adj, params, num_heads=num_heads,
                          latent_dim=latent_dim, feat_dim=feat_dim)
    ref = jax.block_until_ready(ref)

    assert out.shape == (N, feat_dim)
    # Tolerance is slightly looser than pure-f32 because the kernel uses the
    # approximate EUP reciprocal in the softmax normalization; any structural
    # error would be orders of magnitude larger than this.
    np.testing.assert_allclose(np.asarray(out), np.asarray(ref),
                               rtol=5e-3, atol=5e-3)
    print("KERNEL_OK")
</pallas_src>

<mosaic_0001>
module attributes {stable_mosaic.version = 11 : i64} {
  func.func @_proto_graph_kernel(%arg0: memref<16x32xf32, #tpu.memory_space<vmem>>, %arg1: memref<16x16xf32, #tpu.memory_space<vmem>>, %arg2: memref<32x32xf32, #tpu.memory_space<vmem>>, %arg3: memref<4x8xf32, #tpu.memory_space<vmem>>, %arg4: memref<4x8xf32, #tpu.memory_space<vmem>>, %arg5: memref<4x8xf32, #tpu.memory_space<vmem>>, %arg6: memref<32x32xf32, #tpu.memory_space<vmem>>, %arg7: memref<1x32xf32, #tpu.memory_space<vmem>>, %arg8: memref<1x32xf32, #tpu.memory_space<vmem>>, %arg9: memref<1x32xf32, #tpu.memory_space<vmem>>, %arg10: memref<16x32xf32, #tpu.memory_space<vmem>>) attributes {dimension_semantics = [], scalar_prefetch = 0 : i64, scratch_operands = 0 : i64, tpu.core_type = #tpu.core_type<tc>} {
    %c0 = arith.constant 0 : index
    %c0_0 = arith.constant 0 : index
    %0 = vector.load %arg0[%c0, %c0_0] : memref<16x32xf32, #tpu.memory_space<vmem>>, vector<16x32xf32>
    %c0_1 = arith.constant 0 : index
    %c0_2 = arith.constant 0 : index
    %1 = vector.load %arg1[%c0_1, %c0_2] : memref<16x16xf32, #tpu.memory_space<vmem>>, vector<16x16xf32>
    %c0_3 = arith.constant 0 : index
    %c0_4 = arith.constant 0 : index
    %2 = vector.load %arg6[%c0_3, %c0_4] : memref<32x32xf32, #tpu.memory_space<vmem>>, vector<32x32xf32>
    %c0_5 = arith.constant 0 : index
    %c0_6 = arith.constant 0 : index
    %3 = vector.load %arg3[%c0_5, %c0_6] : memref<4x8xf32, #tpu.memory_space<vmem>>, vector<4x8xf32>
    %c0_7 = arith.constant 0 : index
    %c0_8 = arith.constant 0 : index
    %4 = vector.load %arg4[%c0_7, %c0_8] : memref<4x8xf32, #tpu.memory_space<vmem>>, vector<4x8xf32>
    %c0_9 = arith.constant 0 : index
    %c0_10 = arith.constant 0 : index
    %5 = vector.load %arg5[%c0_9, %c0_10] : memref<4x8xf32, #tpu.memory_space<vmem>>, vector<4x8xf32>
    %c0_11 = arith.constant 0 : index
    %c0_12 = arith.constant 0 : index
    %6 = vector.load %arg2[%c0_11, %c0_12] : memref<32x32xf32, #tpu.memory_space<vmem>>, vector<32x32xf32>
    %cst = arith.constant dense<0.000000e+00> : vector<16x32xf32>
    %7 = tpu.matmul %0, %6, %cst {dimension_numbers = #tpu.dot_dimension_numbers<[1], [0], [0], [1], [0, 0, 1, 1], [], []>} : vector<16x32xf32>, vector<32x32xf32>, vector<16x32xf32> -> vector<16x32xf32>
    %cst_13 = arith.constant 0.000000e+00 : f32
    %8 = vector.broadcast %cst_13 : f32 to vector<16x32xf32>
    %9 = vector.extract_strided_slice %7 {offsets = [0, 0], sizes = [16, 8], strides = [1, 1]} : vector<16x32xf32> to vector<16x8xf32>
    %10 = vector.extract_strided_slice %4 {offsets = [0, 0], sizes = [1, 8], strides = [1, 1]} : vector<4x8xf32> to vector<1x8xf32>
    %11 = vector.broadcast %10 : vector<1x8xf32> to vector<16x8xf32>
    %12 = arith.mulf %9, %11 : vector<16x8xf32>
    %cst_14 = arith.constant dense<0.000000e+00> : vector<16xf32>
    %13 = vector.multi_reduction <add>, %12, %cst_14 [1] : vector<16x8xf32> to vector<16xf32>
    %14 = vector.shape_cast %13 : vector<16xf32> to vector<16x1xf32>
    %15 = vector.extract_strided_slice %3 {offsets = [0, 0], sizes = [1, 8], strides = [1, 1]} : vector<4x8xf32> to vector<1x8xf32>
    %cst_15 = arith.constant dense<0.000000e+00> : vector<1x16xf32>
    %16 = tpu.matmul %15, %9, %cst_15 {dimension_numbers = #tpu.dot_dimension_numbers<[1], [1], [0], [0], [0, 0, 1, 0], [], []>} : vector<1x8xf32>, vector<16x8xf32>, vector<1x16xf32> -> vector<1x16xf32>
    %17 = vector.broadcast %14 : vector<16x1xf32> to vector<16x16xf32>
    %18 = vector.broadcast %16 : vector<1x16xf32> to vector<16x16xf32>
    %19 = arith.addf %17, %18 : vector<16x16xf32>
    %cst_16 = arith.constant 0.000000e+00 : f32
    %20 = vector.broadcast %cst_16 : f32 to vector<16x16xf32>
    %21 = arith.cmpf ogt, %19, %20 : vector<16x16xf32>
    %cst_17 = arith.constant 2.000000e-01 : f32
    %22 = vector.broadcast %cst_17 : f32 to vector<16x16xf32>
    %23 = arith.mulf %22, %19 : vector<16x16xf32>
    %24 = arith.select %21, %19, %23 : vector<16x16xi1>, vector<16x16xf32>
    %25 = arith.addf %24, %1 : vector<16x16xf32>
    %cst_18 = arith.constant dense<0xFF800000> : vector<16xf32>
    %26 = vector.multi_reduction <maximumf>, %25, %cst_18 [1] : vector<16x16xf32> to vector<16xf32>
    %27 = vector.shape_cast %26 : vector<16xf32> to vector<16x1xf32>
    %28 = vector.broadcast %27 : vector<16x1xf32> to vector<16x16xf32>
    %29 = arith.subf %25, %28 : vector<16x16xf32>
    %30 = math.exp %29 : vector<16x16xf32>
    %cst_19 = arith.constant dense<0.000000e+00> : vector<16xf32>
    %31 = vector.multi_reduction <add>, %30, %cst_19 [1] : vector<16x16xf32> to vector<16xf32>
    %32 = vector.shape_cast %31 : vector<16xf32> to vector<16x1xf32>
    %33 = tpu.reciprocal %32 {approx = true} : vector<16x1xf32> -> vector<16x1xf32>
    %34 = vector.broadcast %33 : vector<16x1xf32> to vector<16x16xf32>
    %35 = arith.mulf %30, %34 : vector<16x16xf32>
    %cst_20 = arith.constant dense<0.000000e+00> : vector<16x8xf32>
    %36 = tpu.matmul %35, %9, %cst_20 {dimension_numbers = #tpu.dot_dimension_numbers<[1], [0], [0], [1], [0, 0, 1, 1], [], []>} : vector<16x16xf32>, vector<16x8xf32>, vector<16x8xf32> -> vector<16x8xf32>
    %37 = vector.extract_strided_slice %5 {offsets = [0, 0], sizes = [1, 8], strides = [1, 1]} : vector<4x8xf32> to vector<1x8xf32>
    %38 = vector.broadcast %37 : vector<1x8xf32> to vector<16x8xf32>
    %39 = arith.addf %36, %38 : vector<16x8xf32>
    %cst_21 = arith.constant 0.000000e+00 : f32
    %40 = vector.broadcast %cst_21 : f32 to vector<16x8xf32>
    %41 = arith.cmpf ogt, %39, %40 : vector<16x8xf32>
    %cst_22 = arith.constant 0.000000e+00 : f32
    %42 = vector.broadcast %cst_22 : f32 to vector<16x8xf32>
    %43 = arith.minimumf %39, %42 : vector<16x8xf32>
    %44 = math.exp %43 : vector<16x8xf32>
    %cst_23 = arith.constant 1.000000e+00 : f32
    %45 = vector.broadcast %cst_23 : f32 to vector<16x8xf32>
    %46 = arith.subf %44, %45 : vector<16x8xf32>
    %47 = arith.select %41, %39, %46 : vector<16x8xi1>, vector<16x8xf32>
    %48 = vector.extract_strided_slice %2 {offsets = [0, 0], sizes = [8, 32], strides = [1, 1]} : vector<32x32xf32> to vector<8x32xf32>
    %cst_24 = arith.constant dense<0.000000e+00> : vector<16x32xf32>
    %49 = tpu.matmul %47, %48, %cst_24 {dimension_numbers = #tpu.dot_dimension_numbers<[1], [0], [0], [1], [0, 0, 1, 1], [], []>} : vector<16x8xf32>, vector<8x32xf32>, vector<16x32xf32> -> vector<16x32xf32>
    %50 = arith.addf %8, %49 : vector<16x32xf32>
    %51 = vector.extract_strided_slice %7 {offsets = [0, 8], sizes = [16, 8], strides = [1, 1]} : vector<16x32xf32> to vector<16x8xf32>
    %52 = vector.extract_strided_slice %4 {offsets = [1, 0], sizes = [1, 8], strides = [1, 1]} : vector<4x8xf32> to vector<1x8xf32>
    %53 = vector.broadcast %52 : vector<1x8xf32> to vector<16x8xf32>
    %54 = arith.mulf %51, %53 : vector<16x8xf32>
    %cst_25 = arith.constant dense<0.000000e+00> : vector<16xf32>
    %55 = vector.multi_reduction <add>, %54, %cst_25 [1] : vector<16x8xf32> to vector<16xf32>
    %56 = vector.shape_cast %55 : vector<16xf32> to vector<16x1xf32>
    %57 = vector.extract_strided_slice %3 {offsets = [1, 0], sizes = [1, 8], strides = [1, 1]} : vector<4x8xf32> to vector<1x8xf32>
    %cst_26 = arith.constant dense<0.000000e+00> : vector<1x16xf32>
    %58 = tpu.matmul %57, %51, %cst_26 {dimension_numbers = #tpu.dot_dimension_numbers<[1], [1], [0], [0], [0, 0, 1, 0], [], []>} : vector<1x8xf32>, vector<16x8xf32>, vector<1x16xf32> -> vector<1x16xf32>
    %59 = vector.broadcast %56 : vector<16x1xf32> to vector<16x16xf32>
    %60 = vector.broadcast %58 : vector<1x16xf32> to vector<16x16xf32>
    %61 = arith.addf %59, %60 : vector<16x16xf32>
    %cst_27 = arith.constant 0.000000e+00 : f32
    %62 = vector.broadcast %cst_27 : f32 to vector<16x16xf32>
    %63 = arith.cmpf ogt, %61, %62 : vector<16x16xf32>
    %cst_28 = arith.constant 2.000000e-01 : f32
    %64 = vector.broadcast %cst_28 : f32 to vector<16x16xf32>
    %65 = arith.mulf %64, %61 : vector<16x16xf32>
    %66 = arith.select %63, %61, %65 : vector<16x16xi1>, vector<16x16xf32>
    %67 = arith.addf %66, %1 : vector<16x16xf32>
    %cst_29 = arith.constant dense<0xFF800000> : vector<16xf32>
    %68 = vector.multi_reduction <maximumf>, %67, %cst_29 [1] : vector<16x16xf32> to vector<16xf32>
    %69 = vector.shape_cast %68 : vector<16xf32> to vector<16x1xf32>
    %70 = vector.broadcast %69 : vector<16x1xf32> to vector<16x16xf32>
    %71 = arith.subf %67, %70 : vector<16x16xf32>
    %72 = math.exp %71 : vector<16x16xf32>
    %cst_30 = arith.constant dense<0.000000e+00> : vector<16xf32>
    %73 = vector.multi_reduction <add>, %72, %cst_30 [1] : vector<16x16xf32> to vector<16xf32>
    %74 = vector.shape_cast %73 : vector<16xf32> to vector<16x1xf32>
    %75 = tpu.reciprocal %74 {approx = true} : vector<16x1xf32> -> vector<16x1xf32>
    %76 = vector.broadcast %75 : vector<16x1xf32> to vector<16x16xf32>
    %77 = arith.mulf %72, %76 : vector<16x16xf32>
    %cst_31 = arith.constant dense<0.000000e+00> : vector<16x8xf32>
    %78 = tpu.matmul %77, %51, %cst_31 {dimension_numbers = #tpu.dot_dimension_numbers<[1], [0], [0], [1], [0, 0, 1, 1], [], []>} : vector<16x16xf32>, vector<16x8xf32>, vector<16x8xf32> -> vector<16x8xf32>
    %79 = vector.extract_strided_slice %5 {offsets = [1, 0], sizes = [1, 8], strides = [1, 1]} : vector<4x8xf32> to vector<1x8xf32>
    %80 = vector.broadcast %79 : vector<1x8xf32> to vector<16x8xf32>
    %81 = arith.addf %78, %80 : vector<16x8xf32>
    %cst_32 = arith.constant 0.000000e+00 : f32
    %82 = vector.broadcast %cst_32 : f32 to vector<16x8xf32>
    %83 = arith.cmpf ogt, %81, %82 : vector<16x8xf32>
    %cst_33 = arith.constant 0.000000e+00 : f32
    %84 = vector.broadcast %cst_33 : f32 to vector<16x8xf32>
    %85 = arith.minimumf %81, %84 : vector<16x8xf32>
    %86 = math.exp %85 : vector<16x8xf32>
    %cst_34 = arith.constant 1.000000e+00 : f32
    %87 = vector.broadcast %cst_34 : f32 to vector<16x8xf32>
    %88 = arith.subf %86, %87 : vector<16x8xf32>
    %89 = arith.select %83, %81, %88 : vector<16x8xi1>, vector<16x8xf32>
    %90 = vector.extract_strided_slice %2 {offsets = [8, 0], sizes = [8, 32], strides = [1, 1]} : vector<32x32xf32> to vector<8x32xf32>
    %cst_35 = arith.constant dense<0.000000e+00> : vector<16x32xf32>
    %91 = tpu.matmul %89, %90, %cst_35 {dimension_numbers = #tpu.dot_dimension_numbers<[1], [0], [0], [1], [0, 0, 1, 1], [], []>} : vector<16x8xf32>, vector<8x32xf32>, vector<16x32xf32> -> vector<16x32xf32>
    %92 = arith.addf %50, %91 : vector<16x32xf32>
    %93 = vector.extract_strided_slice %7 {offsets = [0, 16], sizes = [16, 8], strides = [1, 1]} : vector<16x32xf32> to vector<16x8xf32>
    %94 = vector.extract_strided_slice %4 {offsets = [2, 0], sizes = [1, 8], strides = [1, 1]} : vector<4x8xf32> to vector<1x8xf32>
    %95 = vector.broadcast %94 : vector<1x8xf32> to vector<16x8xf32>
    %96 = arith.mulf %93, %95 : vector<16x8xf32>
    %cst_36 = arith.constant dense<0.000000e+00> : vector<16xf32>
    %97 = vector.multi_reduction <add>, %96, %cst_36 [1] : vector<16x8xf32> to vector<16xf32>
    %98 = vector.shape_cast %97 : vector<16xf32> to vector<16x1xf32>
    %99 = vector.extract_strided_slice %3 {offsets = [2, 0], sizes = [1, 8], strides = [1, 1]} : vector<4x8xf32> to vector<1x8xf32>
    %cst_37 = arith.constant dense<0.000000e+00> : vector<1x16xf32>
    %100 = tpu.matmul %99, %93, %cst_37 {dimension_numbers = #tpu.dot_dimension_numbers<[1], [1], [0], [0], [0, 0, 1, 0], [], []>} : vector<1x8xf32>, vector<16x8xf32>, vector<1x16xf32> -> vector<1x16xf32>
    %101 = vector.broadcast %98 : vector<16x1xf32> to vector<16x16xf32>
    %102 = vector.broadcast %100 : vector<1x16xf32> to vector<16x16xf32>
    %103 = arith.addf %101, %102 : vector<16x16xf32>
    %cst_38 = arith.constant 0.000000e+00 : f32
    %104 = vector.broadcast %cst_38 : f32 to vector<16x16xf32>
    %105 = arith.cmpf ogt, %103, %104 : vector<16x16xf32>
    %cst_39 = arith.constant 2.000000e-01 : f32
    %106 = vector.broadcast %cst_39 : f32 to vector<16x16xf32>
    %107 = arith.mulf %106, %103 : vector<16x16xf32>
    %108 = arith.select %105, %103, %107 : vector<16x16xi1>, vector<16x16xf32>
    %109 = arith.addf %108, %1 : vector<16x16xf32>
    %cst_40 = arith.constant dense<0xFF800000> : vector<16xf32>
    %110 = vector.multi_reduction <maximumf>, %109, %cst_40 [1] : vector<16x16xf32> to vector<16xf32>
    %111 = vector.shape_cast %110 : vector<16xf32> to vector<16x1xf32>
    %112 = vector.broadcast %111 : vector<16x1xf32> to vector<16x16xf32>
    %113 = arith.subf %109, %112 : vector<16x16xf32>
    %114 = math.exp %113 : vector<16x16xf32>
    %cst_41 = arith.constant dense<0.000000e+00> : vector<16xf32>
    %115 = vector.multi_reduction <add>, %114, %cst_41 [1] : vector<16x16xf32> to vector<16xf32>
    %116 = vector.shape_cast %115 : vector<16xf32> to vector<16x1xf32>
    %117 = tpu.reciprocal %116 {approx = true} : vector<16x1xf32> -> vector<16x1xf32>
    %118 = vector.broadcast %117 : vector<16x1xf32> to vector<16x16xf32>
    %119 = arith.mulf %114, %118 : vector<16x16xf32>
    %cst_42 = arith.constant dense<0.000000e+00> : vector<16x8xf32>
    %120 = tpu.matmul %119, %93, %cst_42 {dimension_numbers = #tpu.dot_dimension_numbers<[1], [0], [0], [1], [0, 0, 1, 1], [], []>} : vector<16x16xf32>, vector<16x8xf32>, vector<16x8xf32> -> vector<16x8xf32>
    %121 = vector.extract_strided_slice %5 {offsets = [2, 0], sizes = [1, 8], strides = [1, 1]} : vector<4x8xf32> to vector<1x8xf32>
    %122 = vector.broadcast %121 : vector<1x8xf32> to vector<16x8xf32>
    %123 = arith.addf %120, %122 : vector<16x8xf32>
    %cst_43 = arith.constant 0.000000e+00 : f32
    %124 = vector.broadcast %cst_43 : f32 to vector<16x8xf32>
    %125 = arith.cmpf ogt, %123, %124 : vector<16x8xf32>
    %cst_44 = arith.constant 0.000000e+00 : f32
    %126 = vector.broadcast %cst_44 : f32 to vector<16x8xf32>
    %127 = arith.minimumf %123, %126 : vector<16x8xf32>
    %128 = math.exp %127 : vector<16x8xf32>
    %cst_45 = arith.constant 1.000000e+00 : f32
    %129 = vector.broadcast %cst_45 : f32 to vector<16x8xf32>
    %130 = arith.subf %128, %129 : vector<16x8xf32>
    %131 = arith.select %125, %123, %130 : vector<16x8xi1>, vector<16x8xf32>
    %132 = vector.extract_strided_slice %2 {offsets = [16, 0], sizes = [8, 32], strides = [1, 1]} : vector<32x32xf32> to vector<8x32xf32>
    %cst_46 = arith.constant dense<0.000000e+00> : vector<16x32xf32>
    %133 = tpu.matmul %131, %132, %cst_46 {dimension_numbers = #tpu.dot_dimension_numbers<[1], [0], [0], [1], [0, 0, 1, 1], [], []>} : vector<16x8xf32>, vector<8x32xf32>, vector<16x32xf32> -> vector<16x32xf32>
    %134 = arith.addf %92, %133 : vector<16x32xf32>
    %135 = vector.extract_strided_slice %7 {offsets = [0, 24], sizes = [16, 8], strides = [1, 1]} : vector<16x32xf32> to vector<16x8xf32>
    %136 = vector.extract_strided_slice %4 {offsets = [3, 0], sizes = [1, 8], strides = [1, 1]} : vector<4x8xf32> to vector<1x8xf32>
    %137 = vector.broadcast %136 : vector<1x8xf32> to vector<16x8xf32>
    %138 = arith.mulf %135, %137 : vector<16x8xf32>
    %cst_47 = arith.constant dense<0.000000e+00> : vector<16xf32>
    %139 = vector.multi_reduction <add>, %138, %cst_47 [1] : vector<16x8xf32> to vector<16xf32>
    %140 = vector.shape_cast %139 : vector<16xf32> to vector<16x1xf32>
    %141 = vector.extract_strided_slice %3 {offsets = [3, 0], sizes = [1, 8], strides = [1, 1]} : vector<4x8xf32> to vector<1x8xf32>
    %cst_48 = arith.constant dense<0.000000e+00> : vector<1x16xf32>
    %142 = tpu.matmul %141, %135, %cst_48 {dimension_numbers = #tpu.dot_dimension_numbers<[1], [1], [0], [0], [0, 0, 1, 0], [], []>} : vector<1x8xf32>, vector<16x8xf32>, vector<1x16xf32> -> vector<1x16xf32>
    %143 = vector.broadcast %140 : vector<16x1xf32> to vector<16x16xf32>
    %144 = vector.broadcast %142 : vector<1x16xf32> to vector<16x16xf32>
    %145 = arith.addf %143, %144 : vector<16x16xf32>
    %cst_49 = arith.constant 0.000000e+00 : f32
    %146 = vector.broadcast %cst_49 : f32 to vector<16x16xf32>
    %147 = arith.cmpf ogt, %145, %146 : vector<16x16xf32>
    %cst_50 = arith.constant 2.000000e-01 : f32
    %148 = vector.broadcast %cst_50 : f32 to vector<16x16xf32>
    %149 = arith.mulf %148, %145 : vector<16x16xf32>
    %150 = arith.select %147, %145, %149 : vector<16x16xi1>, vector<16x16xf32>
    %151 = arith.addf %150, %1 : vector<16x16xf32>
    %cst_51 = arith.constant dense<0xFF800000> : vector<16xf32>
    %152 = vector.multi_reduction <maximumf>, %151, %cst_51 [1] : vector<16x16xf32> to vector<16xf32>
    %153 = vector.shape_cast %152 : vector<16xf32> to vector<16x1xf32>
    %154 = vector.broadcast %153 : vector<16x1xf32> to vector<16x16xf32>
    %155 = arith.subf %151, %154 : vector<16x16xf32>
    %156 = math.exp %155 : vector<16x16xf32>
    %cst_52 = arith.constant dense<0.000000e+00> : vector<16xf32>
    %157 = vector.multi_reduction <add>, %156, %cst_52 [1] : vector<16x16xf32> to vector<16xf32>
    %158 = vector.shape_cast %157 : vector<16xf32> to vector<16x1xf32>
    %159 = tpu.reciprocal %158 {approx = true} : vector<16x1xf32> -> vector<16x1xf32>
    %160 = vector.broadcast %159 : vector<16x1xf32> to vector<16x16xf32>
    %161 = arith.mulf %156, %160 : vector<16x16xf32>
    %cst_53 = arith.constant dense<0.000000e+00> : vector<16x8xf32>
    %162 = tpu.matmul %161, %135, %cst_53 {dimension_numbers = #tpu.dot_dimension_numbers<[1], [0], [0], [1], [0, 0, 1, 1], [], []>} : vector<16x16xf32>, vector<16x8xf32>, vector<16x8xf32> -> vector<16x8xf32>
    %163 = vector.extract_strided_slice %5 {offsets = [3, 0], sizes = [1, 8], strides = [1, 1]} : vector<4x8xf32> to vector<1x8xf32>
    %164 = vector.broadcast %163 : vector<1x8xf32> to vector<16x8xf32>
    %165 = arith.addf %162, %164 : vector<16x8xf32>
    %cst_54 = arith.constant 0.000000e+00 : f32
    %166 = vector.broadcast %cst_54 : f32 to vector<16x8xf32>
    %167 = arith.cmpf ogt, %165, %166 : vector<16x8xf32>
    %cst_55 = arith.constant 0.000000e+00 : f32
    %168 = vector.broadcast %cst_55 : f32 to vector<16x8xf32>
    %169 = arith.minimumf %165, %168 : vector<16x8xf32>
    %170 = math.exp %169 : vector<16x8xf32>
    %cst_56 = arith.constant 1.000000e+00 : f32
    %171 = vector.broadcast %cst_56 : f32 to vector<16x8xf32>
    %172 = arith.subf %170, %171 : vector<16x8xf32>
    %173 = arith.select %167, %165, %172 : vector<16x8xi1>, vector<16x8xf32>
    %174 = vector.extract_strided_slice %2 {offsets = [24, 0], sizes = [8, 32], strides = [1, 1]} : vector<32x32xf32> to vector<8x32xf32>
    %cst_57 = arith.constant dense<0.000000e+00> : vector<16x32xf32>
    %175 = tpu.matmul %173, %174, %cst_57 {dimension_numbers = #tpu.dot_dimension_numbers<[1], [0], [0], [1], [0, 0, 1, 1], [], []>} : vector<16x8xf32>, vector<8x32xf32>, vector<16x32xf32> -> vector<16x32xf32>
    %176 = arith.addf %134, %175 : vector<16x32xf32>
    %c0_58 = arith.constant 0 : index
    %c0_59 = arith.constant 0 : index
    %177 = vector.load %arg8[%c0_58, %c0_59] : memref<1x32xf32, #tpu.memory_space<vmem>>, vector<1x32xf32>
    %178 = vector.broadcast %177 : vector<1x32xf32> to vector<16x32xf32>
    %179 = arith.mulf %176, %178 : vector<16x32xf32>
    %cst_60 = arith.constant dense<0.000000e+00> : vector<16xf32>
    %180 = vector.multi_reduction <add>, %179, %cst_60 [1] : vector<16x32xf32> to vector<16xf32>
    %181 = vector.shape_cast %180 : vector<16xf32> to vector<16x1xf32>
    %c0_61 = arith.constant 0 : index
    %c0_62 = arith.constant 0 : index
    %182 = vector.load %arg7[%c0_61, %c0_62] : memref<1x32xf32, #tpu.memory_space<vmem>>, vector<1x32xf32>
    %cst_63 = arith.constant dense<0.000000e+00> : vector<1x16xf32>
    %183 = tpu.matmul %182, %176, %cst_63 {dimension_numbers = #tpu.dot_dimension_numbers<[1], [1], [0], [0], [0, 0, 1, 0], [], []>} : vector<1x32xf32>, vector<16x32xf32>, vector<1x16xf32> -> vector<1x16xf32>
    %184 = vector.broadcast %181 : vector<16x1xf32> to vector<16x16xf32>
    %185 = vector.broadcast %183 : vector<1x16xf32> to vector<16x16xf32>
    %186 = arith.addf %184, %185 : vector<16x16xf32>
    %cst_64 = arith.constant 0.000000e+00 : f32
    %187 = vector.broadcast %cst_64 : f32 to vector<16x16xf32>
    %188 = arith.cmpf ogt, %186, %187 : vector<16x16xf32>
    %cst_65 = arith.constant 2.000000e-01 : f32
    %189 = vector.broadcast %cst_65 : f32 to vector<16x16xf32>
    %190 = arith.mulf %189, %186 : vector<16x16xf32>
    %191 = arith.select %188, %186, %190 : vector<16x16xi1>, vector<16x16xf32>
    %192 = arith.addf %191, %1 : vector<16x16xf32>
    %cst_66 = arith.constant dense<0xFF800000> : vector<16xf32>
    %193 = vector.multi_reduction <maximumf>, %192, %cst_66 [1] : vector<16x16xf32> to vector<16xf32>
    %194 = vector.shape_cast %193 : vector<16xf32> to vector<16x1xf32>
    %195 = vector.broadcast %194 : vector<16x1xf32> to vector<16x16xf32>
    %196 = arith.subf %192, %195 : vector<16x16xf32>
    %197 = math.exp %196 : vector<16x16xf32>
    %cst_67 = arith.constant dense<0.000000e+00> : vector<16xf32>
    %198 = vector.multi_reduction <add>, %197, %cst_67 [1] : vector<16x16xf32> to vector<16xf32>
    %199 = vector.shape_cast %198 : vector<16xf32> to vector<16x1xf32>
    %200 = tpu.reciprocal %199 {approx = true} : vector<16x1xf32> -> vector<16x1xf32>
    %201 = vector.broadcast %200 : vector<16x1xf32> to vector<16x16xf32>
    %202 = arith.mulf %197, %201 : vector<16x16xf32>
    %cst_68 = arith.constant dense<0.000000e+00> : vector<16x32xf32>
    %203 = tpu.matmul %202, %176, %cst_68 {dimension_numbers = #tpu.dot_dimension_numbers<[1], [0], [0], [1], [0, 0, 1, 1], [], []>} : vector<16x16xf32>, vector<16x32xf32>, vector<16x32xf32> -> vector<16x32xf32>
    %c0_69 = arith.constant 0 : index
    %c0_70 = arith.constant 0 : index
    %204 = vector.load %arg9[%c0_69, %c0_70] : memref<1x32xf32, #tpu.memory_space<vmem>>, vector<1x32xf32>
    %205 = vector.broadcast %204 : vector<1x32xf32> to vector<16x32xf32>
    %206 = arith.addf %203, %205 : vector<16x32xf32>
    %c0_71 = arith.constant 0 : index
    %c0_72 = arith.constant 0 : index
    %207 = vector.load %arg10[%c0_71, %c0_72] : memref<16x32xf32, #tpu.memory_space<vmem>>, vector<16x32xf32>
    tpu.vector_store %arg10[%c0_71, %c0_72], %206 {strides = array<i32>} : memref<16x32xf32, #tpu.memory_space<vmem>>, vector<16x32xf32>,
    return
  }
}

</mosaic_0001>

<bundles_post_ra>
// kernel: tpu_custom_call.1
= control target key start
LH: loop header
LB: loop body
LE: loop exit
PB: predicated region body
PF: predicated region fallthrough
CT: control target
= control target key end

     0   :  { %15 = vsyncpa [#allocation3], 0  ;;  %s1473_s0 = inlined_call_operand.hbm [shape: f32[16,32], index: 0, kind: input, shape index: {}]   ;;  %s1474_s1 = inlined_call_operand.hbm [shape: f32[16,16], index: 1, kind: input, shape index: {}]   ;;  %s1475_s2 = inlined_call_operand.hbm [shape: f32[32,32], index: 2, kind: input, shape index: {}]   ;;  %s1476_s3 = inlined_call_operand.hbm [shape: f32[4,8], index: 3, kind: input, shape index: {}]   ;;  %s1477_s4 = inlined_call_operand.hbm [shape: f32[4,8], index: 4, kind: input, shape index: {}]   ;;  %s1478_s5 = inlined_call_operand.vmem [shape: f32[4,8], index: 5, kind: input, shape index: {}]   ;;  %s1479_s6 = inlined_call_operand.hbm [shape: f32[32,32], index: 6, kind: input, shape index: {}]   ;;  %s1480_s7 = inlined_call_operand.vmem [shape: f32[1,32], index: 7, kind: input, shape index: {}]   ;;  %s1481_s8 = inlined_call_operand.vmem [shape: f32[1,32], index: 8, kind: input, shape index: {}]   ;;  %s1482_s9 = inlined_call_operand.vmem [shape: f32[1,32], index: 9, kind: input, shape index: {}]   ;;  %s1483_s10 = inlined_call_operand.hbm [shape: f32[16,32], index: 10, kind: output, shape index: {}]  }
   0x1   :  { %16 = vsyncpa [#allocation6], 0 }
   0x2   :  { %17 = vsyncpa [#allocation9], 0 }
   0x3   :  { %18 = vsyncpa [#allocation12], 0 }
   0x4   :  { %19 = vsyncpa [#allocation4], 0  ;;  %s37_s15 = sshll.u32 %s1474_s1, 4  ;;  %s1220_s16 = smov [#allocation5]   ;;  %s38_s15 = int_to_ptr.hbm [resolvable:$true] %s37_s15 }
   0x5   :  { %s39_s17 = sshll.u32 %s1220_s16, 4  ;;  %s64_s20 = sshll.u32 %s1476_s3, 4  ;;  %s40_s17 = int_to_ptr.vmem [resolvable:$true] %s39_s17  ;;  %s65_s20 = int_to_ptr.hbm [resolvable:$true] %s64_s20 }
   0x6   :  { %s1221_s21 = smov 128   ;;  %s1222_s22 = smov 8  }
   0x7   :  { %45 = dma.hbm_to_vmem [thread:$0]  %s38_s15, 256, %s40_s17, [#allocation6], %s1221_s21, %s1221_s21, %s1222_s22  }
   0x8   :  { %s1223_s23 = smov [#allocation8]   ;;  %s24_s1 = sshll.u32 %s1473_s0, 4  ;;  %s25_s1 = int_to_ptr.hbm [resolvable:$true] %s24_s1 }
   0x9   :  { %s66_s24 = sshll.u32 %s1223_s23, 4  ;;  %s50_s3 = sshll.u32 %s1475_s2, 4  ;;  %s67_s24 = int_to_ptr.vmem [resolvable:$true] %s66_s24  ;;  %s51_s3 = int_to_ptr.hbm [resolvable:$true] %s50_s3 }
   0xa   :  { %69 = dma.hbm_to_vmem [thread:$0]  %s65_s20, 64, %s67_s24, [#allocation9]  }
   0xb   :  { %s1224_s29 = smov [#allocation2]   ;;  %s1225_s11 = smov [#allocation7]  }
   0xc   :  { %s26_s30 = sshll.u32 %s1224_s29, 4  ;;  %s52_s12 = sshll.u32 %s1225_s11, 4  ;;  %s27_s30 = int_to_ptr.vmem [resolvable:$true] %s26_s30  ;;  %s53_s12 = int_to_ptr.vmem [resolvable:$true] %s52_s12 }
   0xd   :  { %32 = dma.hbm_to_vmem [thread:$0]  %s25_s1, 256, %s27_s30, [#allocation3], %s1221_s21, %s1221_s21, %s1222_s22  }
   0xe   :  { %s75_s0 = sshll.u32 %s1477_s4, 4  ;;  %s87_s16 = sshll.u32 %s1479_s6, 4  ;;  %s76_s0 = int_to_ptr.hbm [resolvable:$true] %s75_s0  ;;  %s88_s16 = int_to_ptr.hbm [resolvable:$true] %s87_s16 }
   0xf   :  { %58 = dma.hbm_to_vmem [thread:$0]  %s51_s3, 512, %s53_s12, [#allocation6], %s1221_s21, %s1221_s21, %s1222_s22  }
  0x10   :  { %s1226_s17 = smov [#allocation10]   ;;  %s1227_s19 = smov [#allocation11]  }
  0x11   :  { %s77_s18 = sshll.u32 %s1226_s17, 4  ;;  %s89_s20 = sshll.u32 %s1227_s19, 4  ;;  %s78_s18 = int_to_ptr.vmem [resolvable:$true] %s77_s18  ;;  %s90_s20 = int_to_ptr.vmem [resolvable:$true] %s89_s20 }
  0x12   :  { %80 = dma.hbm_to_vmem [thread:$0]  %s76_s0, 64, %s78_s18, [#allocation9]  }
  0x13   :  { %95 = dma.hbm_to_vmem [thread:$0]  %s88_s16, 512, %s90_s20, [#allocation12], %s1221_s21, %s1221_s21, %s1222_s22  }
  0x14   :  { %1210 = dma.done.wait [#allocation3], 256  }
  0x15   :  { %1211 = vsyncadd [#allocation3], 4294967040 }
  0x16   :  { %1212 = dma.done.wait [#allocation6], 768  }
  0x17   :  { %1213 = vsyncadd [#allocation6], 4294966528 }
  0x18   :  { %1214 = dma.done.wait [#allocation9], 128  }
  0x19   :  { %1215 = vsyncadd [#allocation9], 4294967168 }
  0x1a   :  { %1216 = dma.done.wait [#allocation12], 512  }
  0x1b   :  { %1217 = vsyncadd [#allocation12], 4294966784  ;;  %v140_v0 = vld [vmem:[#allocation7 + $0x18] sm:$0xff]  ;;  %v139_v1 = vld [vmem:[#allocation7 + $0x10] sm:$0xff]  ;;  %vm141_vm0 = vcmask 261120   ;;  %s1228_s4 = smov 120  }
  0x1c   :  { %160 = vmatpush.msra.mxu0 %v140_v0  ;;  %v138_v2 = vld [vmem:[#allocation7 + $0x8] sm:$0xff]  ;;  %v1319_v3 = vld [vmem:[#allocation10] sm:$0xf]  ;;  %vm174_vm1 = vcmask 64512   ;;  %v1338_v13 = vld [vmem:[#allocation8] sm:$0xf] }
  0x1d   :  { %v286_v4 = vperm.slane %v1319_v3, 1  ;;  %v137_v5 = vld [vmem:[#allocation7] sm:$0xff]  ;;  %v127_v7 = vld [vmem:[#allocation2 + $0x8] sm:$0xff]  ;;  %v171_v14 = vperm.slane %v1319_v3, 0  ;;  %v307_v25 = vrot.slane %v1338_v13, 1  ;;  %v1354_v31 = vld [vmem:[#allocation5] sm:$0xff] }
  0x1e   :  { %161 = vmatpush.msra.mxu0 %v139_v1  ;;  %v126_v6 = vld [vmem:[#allocation2] sm:$0xff]  ;;  %vm221_vm3 = vcmask 130048   ;;  %v1358_v38 = vld [vmem:[#allocation5 + $0x8] sm:$0xff]  ;;  %s1229_s6 = smov 104   ;;  %s1230_s23 = smov 112  }
  0x1f   :  { %288 = vrot.lane.b32.xlu1 %v286_v4, %s1222_s22  ;;  %s1231_s24 = smov 24   ;;  %s1232_s25 = smov 16  }
  0x20   :  { %162 = vmatpush.msra.mxu0 %v138_v2  ;;  %s1233_s29 = smov [#allocation13]   ;;  %s909_s13 = sshll.u32 %s1483_s10, 4  ;;  %s910_s13 = int_to_ptr.hbm [resolvable:$true] %s909_s13 }
  0x21   :  { %s907_s30 = sshll.u32 %s1233_s29, 4  ;;  %s908_s30 = int_to_ptr.vmem [resolvable:$true] %s907_s30 }
  0x22   :  { %163 = vmatpush.msra.mxu0 %v137_v5 }
  0x23   :  { %925 = vmatmul.msk.f32.vlgmr.msra.gmra.mxu0 %vm141_vm0, %v126_v6 }
  0x2b   :  { %926 = vmatmul.msk.f32.gmra.mxu0 %vm141_vm0, %v127_v7 }
  0x91   :  { %v289_v8 = vpop.permute.xlu1 %288 }
  0xa0   :  { %v1325_v9 = vpop.f32.mrf.mxu0 }
  0xa1   :  { %v291_v10 = vmul.f32 %v289_v8, %v1325_v9  ;;  %v172_v15 = vmul.f32 %v171_v14, %v1325_v9 }
  0xa3   :  { %295 = vrot.lane.b32.xlu1 %v291_v10, %s1228_s4  ;;  %v175_v16 = vsel %vm174_vm1, %v172_v15, 0.0 }
  0xa8   :  { %v1328_v11 = vpop.f32.mrf.mxu0 }
  0xa9   :  { %310 = vrot.lane.b32.xlu0 %v1328_v11, %s1228_s4  ;;  %927 = vmatpush.xpose.msk.msra.mxu1 %vm174_vm1, %v1328_v11  ;;  %v292_v12 = vmul.f32 %v289_v8, %v1328_v11  ;;  %v173_v17 = vmul.f32 %v171_v14, %v1328_v11 }
  0xaa   :  { %265 = vmatpush.msra.mxu2 %v1328_v11 }
  0xab   :  { %297 = vrot.lane.b32.xlu2 %v292_v12, %s1228_s4  ;;  %v178_v18 = vsel %vm174_vm1, %v173_v17, 0.0 }
  0xac   :  { %266 = vmatpush.msra.mxu2 %v1325_v9 }
  0xad   :  { %928 = vmatpush.xpose.msk.msra.mxu1 %vm174_vm1, %v1325_v9 }
  0xb0   :  { %929 = vmatmul.msk.f32.vlgmr.msra.gmra.mxu1 %vm174_vm1, %v1338_v13 }
  0xb1   :  { %308 = vrot.lane.b32.xlu0 %v1325_v9, %s1228_s4 }
  0xd4   :  { %176 = vadd.xlane.f32.xlu2 %v175_v16  ;;  %v131_v16 = vld [vmem:[#allocation11 + $0x8] sm:$0xff] }
  0xdb   :  { %179 = vadd.xlane.f32.xlu0 %v178_v18 }
 0x105   :  { %v298_v19 = vpop.permute.xlu2 %297 }
 0x106   :  { %v304_v20 = vsel %vm174_vm1, %v298_v19, 0.0 }
 0x107   :  { %305 = vadd.xlane.f32.xlu2 %v304_v20 }
 0x115   :  { %v296_v21 = vpop.permute.xlu1 %295 }
 0x116   :  { %v301_v22 = vsel %vm174_vm1, %v296_v21, 0.0  ;;  %v633_v21 = vperm.slane %v1319_v3, 3 }
 0x117   :  { %302 = vadd.xlane.f32.xlu1 %v301_v22 }
 0x11b   :  { %v311_v23 = vpop.permute.xlu0 %310 }
 0x11c   :  { %934 = vmatpush.xpose.msk.msra.mxu3 %vm174_vm1, %v311_v23  ;;  %394 = vmatpush.msrb.mxu1 %v311_v23 }
 0x11d   :  { %968 = vmatpush.msrb.mxu2 %v311_v23  ;;  %v473_v23 = vperm.slane %v1319_v3, 2 }
 0x123   :  { %v309_v24 = vpop.permute.xlu0 %308 }
 0x124   :  { %935 = vmatpush.xpose.msk.msra.mxu3 %vm174_vm1, %v309_v24  ;;  %395 = vmatpush.msrb.mxu1 %v309_v24 }
 0x125   :  { %969 = vmatpush.msrb.mxu2 %v309_v24 }
 0x127   :  { %936 = vmatmul.msk.f32.vlgmr.msra.gmra.mxu3 %vm174_vm1, %v307_v25 }
 0x128   :  { %436 = vmatpush.msrb.mxu3 %v131_v16 }
 0x12d   :  { %v207_v26 = vpop.f32.mrf.mxu1 }
 0x12e   :  { %v210_v27 = vperm.slane %v207_v26, 0  ;;  %v130_v26 = vld [vmem:[#allocation11] sm:$0xff] }
 0x147   :  { %v177_v28 = vpop.xlane.xlu2 %176 }
 0x148   :  { %v211_v29 = vadd.f32 %v210_v27, %v177_v28 }
 0x14a   :  { %vm213_vm2 = vcmp.gt.f32.partialorder %v211_v29, 0.0  ;;  %v215_v30 = vmul.f32 0.2, %v211_v29 }
 0x14c   :  { %v217_v32 = vsel %vm213_vm2, %v211_v29, %v215_v30 }
 0x14d   :  { %v219_v33 = vadd.f32 %v217_v32, %v1354_v31 }
 0x14e   :  { %v180_v34 = vpop.xlane.xlu0 %179 }
 0x14f   :  { %v212_v35 = vadd.f32 %v210_v27, %v180_v34  ;;  %v222_v36 = vsel %vm221_vm3, %v219_v33, -inf }
 0x150   :  { %223 = vmax.xlane.f32.xlu2 %v222_v36 }
 0x151   :  { %vm214_vm4 = vcmp.gt.f32.partialorder %v212_v35, 0.0  ;;  %v216_v37 = vmul.f32 0.2, %v212_v35 }
 0x153   :  { %v218_v39 = vsel %vm214_vm4, %v212_v35, %v216_v37 }
 0x154   :  { %v220_v40 = vadd.f32 %v218_v39, %v1358_v38 }
 0x156   :  { %v225_v41 = vsel %vm221_vm3, %v220_v40, -inf }
 0x157   :  { %226 = vmax.xlane.f32.xlu0 %v225_v41 }
 0x17a   :  { %v306_v44 = vpop.xlane.xlu2 %305 }
 0x18a   :  { %v303_v45 = vpop.xlane.xlu1 %302 }
 0x1aa   :  { %v335_v42 = vpop.f32.mrf.mxu3 }
 0x1ab   :  { %v338_v43 = vperm.slane %v335_v42, 0  ;;  %v494_v42 = vrot.slane %v1338_v13, 2 }
 0x1ad   :  { %v339_v46 = vadd.f32 %v338_v43, %v303_v45  ;;  %v340_v47 = vadd.f32 %v338_v43, %v306_v44  ;;  %v1398_v43 = vld [vmem:[%s1478_s5] sm:$0xf] }
 0x1ae   :  { %v244_v45 = vperm.slane %v1398_v43, 0 }
 0x1af   :  { %v343_v48 = vmul.f32 0.2, %v339_v46  ;;  %v344_v49 = vmul.f32 0.2, %v340_v47  ;;  %vm341_vm5 = vcmp.gt.f32.partialorder %v339_v46, 0.0  ;;  %vm342_vm6 = vcmp.gt.f32.partialorder %v340_v47, 0.0 }
 0x1b1   :  { %v345_v50 = vsel %vm341_vm5, %v339_v46, %v343_v48  ;;  %v346_v51 = vsel %vm342_vm6, %v340_v47, %v344_v49 }
 0x1b2   :  { %v347_v52 = vadd.f32 %v345_v50, %v1354_v31  ;;  %v348_v53 = vadd.f32 %v346_v51, %v1358_v38 }
 0x1b4   :  { %v349_v54 = vsel %vm221_vm3, %v347_v52, -inf  ;;  %v352_v55 = vsel %vm221_vm3, %v348_v53, -inf }
 0x1b5   :  { %350 = vmax.xlane.f32.xlu1 %v349_v54  ;;  %353 = vmax.xlane.f32.xlu2 %v352_v55 }
 0x1c3   :  { %v224_v56 = vpop.xlane.xlu2 %223 }
 0x1c4   :  { %v228_v57 = vsub.f32 %v219_v33, %v224_v56 }
 0x1c6   :  { %v230_v58 = vmul.f32 1.442695, %v228_v57 }
 0x1c8   :  { %986 = vpow2.f32 %v230_v58 }
 0x1ca   :  { %v227_v59 = vpop.xlane.xlu0 %226 }
 0x1cb   :  { %v229_v60 = vsub.f32 %v220_v40, %v227_v59 }
 0x1cd   :  { %v232_v61 = vmul.f32 1.442695, %v229_v60  ;;  %v371_v60 = vperm.slane %v1398_v43, 1 }
 0x1ce   :  { %v987_v62 = vpop.eup %986 }
 0x1cf   :  { %988 = vpow2.f32 %v232_v61  ;;  %v234_v63 = vsel %vm221_vm3, %v987_v62, 0.0 }
 0x1d0   :  { %235 = vadd.xlane.f32.xlu0 %v234_v63 }
 0x1d5   :  { %v989_v0 = vpop.eup %988 }
 0x1d6   :  { %v237_v1 = vsel %vm221_vm3, %v989_v0, 0.0 }
 0x1d7   :  { %238 = vadd.xlane.f32.xlu1 %v237_v1 }
 0x1f0   :  { %657 = vrot.lane.b32.xlu1 %v1328_v11, %s1229_s6 }
 0x1f8   :  { %495 = vrot.lane.b32.xlu1 %v1325_v9, %s1230_s23 }
 0x228   :  { %v351_v2 = vpop.xlane.xlu1 %350  ;;  %v354_v4 = vpop.xlane.xlu2 %353 }
 0x229   :  { %v355_v5 = vsub.f32 %v347_v52, %v351_v2  ;;  %v356_v6 = vsub.f32 %v348_v53, %v354_v4 }
 0x22b   :  { %v357_v7 = vmul.f32 1.442695, %v355_v5  ;;  %v359_v8 = vmul.f32 1.442695, %v356_v6 }
 0x22d   :  { %990 = vpow2.f32 %v357_v7 }
 0x22e   :  { %992 = vpow2.f32 %v359_v8 }
 0x233   :  { %v991_v10 = vpop.eup %990 }
 0x234   :  { %v993_v12 = vpop.eup %992  ;;  %v361_v14 = vsel %vm221_vm3, %v991_v10, 0.0 }
 0x235   :  { %362 = vadd.xlane.f32.xlu2 %v361_v14  ;;  %v364_v15 = vsel %vm221_vm3, %v993_v12, 0.0 }
 0x236   :  { %365 = vadd.xlane.f32.xlu0 %v364_v15 }
 0x243   :  { %v236_v17 = vpop.xlane.xlu0 %235 }
 0x244   :  { %994 = vrcp.f32 %v236_v17 }
 0x24a   :  { %v995_v18 = vpop.eup %994  ;;  %497 = vrot.lane.b32.xlu0 %v1328_v11, %s1230_s23  ;;  %v239_v19 = vpop.xlane.xlu1 %238 }
 0x24b   :  { %996 = vrcp.f32 %v239_v19  ;;  %v242_v20 = vmul.f32 %v995_v18, %v987_v62 }
 0x24d   :  { %655 = vrot.lane.b32.xlu2 %v1325_v9, %s1229_s6  ;;  %930 = vmatmul.msk.f32.vlgmr.msra.gmra.mxu2 %vm221_vm3, %v242_v20 }
 0x24e   :  { %465 = vmatpush.msra.mxu2 %v130_v26 }
 0x251   :  { %v997_v22 = vpop.eup %996 }
 0x252   :  { %635 = vrot.lane.b32.xlu0 %v633_v21, %s1231_s24  ;;  %v243_v24 = vmul.f32 %v997_v22, %v989_v0  ;;  %v654_v21 = vrot.slane %v1338_v13, 3 }
 0x255   :  { %931 = vmatmul.msk.f32.gmra.mxu2 %vm221_vm3, %v243_v24  ;;  %475 = vrot.lane.b32.xlu2 %v473_v23, %s1232_s25 }
 0x262   :  { %v658_v25 = vpop.permute.xlu1 %657 }
 0x263   :  { %954 = vmatpush.xpose.msk.msra.mxu3 %vm174_vm1, %v658_v25 }
 0x26a   :  { %v496_v37 = vpop.permute.xlu1 %495 }
 0x2a8   :  { %v363_v27 = vpop.xlane.xlu2 %362 }
 0x2a9   :  { %998 = vrcp.f32 %v363_v27  ;;  %v366_v28 = vpop.xlane.xlu0 %365 }
 0x2aa   :  { %1000 = vrcp.f32 %v366_v28 }
 0x2af   :  { %v999_v29 = vpop.eup %998 }
 0x2b0   :  { %v1001_v30 = vpop.eup %1000  ;;  %v656_v32 = vpop.permute.xlu2 %655  ;;  %v369_v3 = vmul.f32 %v999_v29, %v991_v10 }
 0x2b1   :  { %955 = vmatpush.xpose.msk.msra.mxu3 %vm174_vm1, %v656_v32  ;;  %v370_v33 = vmul.f32 %v1001_v30, %v993_v12 }
 0x2b2   :  { %937 = vmatmul.msk.f32.vlgmr.msrb.gmra.mxu1 %vm221_vm3, %v369_v3 }
 0x2b3   :  { %938 = vmatmul.msk.f32.vlgmr.msrb.gmra.mxu2 %vm221_vm3, %v370_v33 }
 0x2b4   :  { %741 = vmatpush.msrb.mxu2 %v658_v25 }
 0x2b6   :  { %742 = vmatpush.msrb.mxu2 %v656_v32 }
 0x2b8   :  { %v476_v34 = vpop.permute.xlu2 %475 }
 0x2b9   :  { %v478_v35 = vmul.f32 %v476_v34, %v1325_v9  ;;  %v479_v44 = vmul.f32 %v476_v34, %v1328_v11 }
 0x2bb   :  { %482 = vrot.lane.b32.xlu2 %v478_v35, %s1230_s23 }
 0x2bc   :  { %v498_v36 = vpop.permute.xlu0 %497 }
 0x2bd   :  { %945 = vmatpush.xpose.msk.msrb.mxu0 %vm174_vm1, %v498_v36 }
 0x2c1   :  { %946 = vmatpush.xpose.msk.msrb.mxu0 %vm174_vm1, %v496_v37 }
 0x2c4   :  { %v636_v39 = vpop.permute.xlu0 %635  ;;  %947 = vmatmul.msk.f32.vlgmr.msrb.gmra.mxu0 %vm174_vm1, %v494_v42 }
 0x2c5   :  { %581 = vmatpush.msra.mxu0 %v498_v36  ;;  %v638_v40 = vmul.f32 %v636_v39, %v1325_v9  ;;  %v639_v41 = vmul.f32 %v636_v39, %v1328_v11 }
 0x2c7   :  { %582 = vmatpush.msra.mxu0 %v496_v37  ;;  %644 = vrot.lane.b32.xlu0 %v639_v41, %s1229_s6 }
 0x2c8   :  { %642 = vrot.lane.b32.xlu1 %v638_v40, %s1229_s6 }
 0x2d0   :  { %484 = vrot.lane.b32.xlu1 %v479_v44, %s1230_s23  ;;  %v268_v9 = vpop.f32.mrf.mxu2 }
 0x2d1   :  { %v269_v46 = vadd.f32 %v268_v9, %v244_v45 }
 0x2d3   :  { %v276_v47 = vmin.f32 %v269_v46, 0.0  ;;  %vm274_vm7 = vcmp.gt.f32.partialorder %v269_v46, 0.0 }
 0x2d5   :  { %v278_v48 = vmul.f32 1.442695, %v276_v47 }
 0x2d7   :  { %1002 = vpow2.f32 %v278_v48 }
 0x2d8   :  { %v271_v49 = vpop.f32.mrf.mxu2 }
 0x2d9   :  { %v272_v50 = vadd.f32 %v271_v49, %v244_v45 }
 0x2db   :  { %v277_v51 = vmin.f32 %v272_v50, 0.0  ;;  %vm275_vm8 = vcmp.gt.f32.partialorder %v272_v50, 0.0 }
 0x2dd   :  { %v1003_v52 = vpop.eup %1002  ;;  %v280_v53 = vmul.f32 1.442695, %v277_v51 }
 0x2de   :  { %v932_v54 = vadd.f32 -1.0, %v1003_v52 }
 0x2df   :  { %1004 = vpow2.f32 %v280_v53 }
 0x2e0   :  { %v284_v55 = vsel %vm274_vm7, %v269_v46, %v932_v54 }
 0x2e1   :  { %943 = vmatmul.msk.f32.vlgmr.msra.gmra.mxu2 %vm174_vm1, %v284_v55 }
 0x2e5   :  { %v1005_v11 = vpop.eup %1004 }
 0x2e6   :  { %v933_v56 = vadd.f32 -1.0, %v1005_v11 }
 0x2e8   :  { %v285_v57 = vsel %vm275_vm8, %v272_v50, %v933_v56 }
 0x2e9   :  { %944 = vmatmul.msk.f32.gmra.mxu2 %vm174_vm1, %v285_v57 }
 0x315   :  { %v483_v58 = vpop.permute.xlu2 %482 }
 0x316   :  { %v488_v59 = vsel %vm174_vm1, %v483_v58, 0.0 }
 0x317   :  { %489 = vadd.xlane.f32.xlu1 %v488_v59 }
 0x32f   :  { %v397_v61 = vpop.f32.mrf.mxu1 }
 0x330   :  { %v398_v62 = vadd.f32 %v397_v61, %v371_v60 }
 0x332   :  { %v405_v63 = vmin.f32 %v398_v62, 0.0  ;;  %vm403_vm9 = vcmp.gt.f32.partialorder %v398_v62, 0.0 }
 0x334   :  { %v407_v0 = vmul.f32 1.442695, %v405_v63 }
 0x336   :  { %1006 = vpow2.f32 %v407_v0  ;;  %v400_v1 = vpop.f32.mrf.mxu2 }
 0x337   :  { %v401_v2 = vadd.f32 %v400_v1, %v371_v60 }
 0x339   :  { %v406_v4 = vmin.f32 %v401_v2, 0.0  ;;  %v645_v5 = vpop.permute.xlu0 %644  ;;  %vm404_vm10 = vcmp.gt.f32.partialorder %v401_v2, 0.0 }
 0x33a   :  { %v643_v6 = vpop.permute.xlu1 %642  ;;  %v651_v7 = vsel %vm174_vm1, %v645_v5, 0.0 }
 0x33b   :  { %v648_v8 = vsel %vm174_vm1, %v643_v6, 0.0  ;;  %v409_v10 = vmul.f32 1.442695, %v406_v4  ;;  %652 = vadd.xlane.f32.xlu2 %v651_v7 }
 0x33c   :  { %649 = vadd.xlane.f32.xlu0 %v648_v8  ;;  %v1007_v12 = vpop.eup %1006 }
 0x33d   :  { %v939_v14 = vadd.f32 -1.0, %v1007_v12  ;;  %1008 = vpow2.f32 %v409_v10 }
 0x33f   :  { %v413_v15 = vsel %vm403_vm9, %v398_v62, %v939_v14 }
 0x340   :  { %941 = vmatmul.msk.f32.vlgmr.msrb.gmra.mxu3 %vm174_vm1, %v413_v15 }
 0x341   :  { %v522_v22 = vpop.f32.mrf.mxu0 }
 0x342   :  { %v485_v16 = vpop.permute.xlu1 %484  ;;  %v525_v23 = vperm.slane %v522_v22, 0 }
 0x343   :  { %v491_v17 = vsel %vm174_vm1, %v485_v16, 0.0  ;;  %v1009_v18 = vpop.eup %1008 }
 0x344   :  { %492 = vadd.xlane.f32.xlu0 %v491_v17  ;;  %v940_v19 = vadd.f32 -1.0, %v1009_v18 }
 0x346   :  { %v414_v20 = vsel %vm404_vm10, %v401_v2, %v940_v19 }
 0x348   :  { %942 = vmatmul.msk.f32.gmra.mxu3 %vm174_vm1, %v414_v20 }
 0x350   :  { %956 = vmatmul.msk.f32.vlgmr.msra.gmra.mxu3 %vm174_vm1, %v654_v21 }
 0x38a   :  { %v490_v24 = vpop.xlane.xlu1 %489 }
 0x38b   :  { %v526_v25 = vadd.f32 %v525_v23, %v490_v24  ;;  %v558_v24 = vperm.slane %v1398_v43, 2 }
 0x38d   :  { %vm528_vm11 = vcmp.gt.f32.partialorder %v526_v25, 0.0  ;;  %v530_v26 = vmul.f32 0.2, %v526_v25 }
 0x38f   :  { %v532_v27 = vsel %vm528_vm11, %v526_v25, %v530_v26 }
 0x390   :  { %v534_v28 = vadd.f32 %v532_v27, %v1354_v31 }
 0x392   :  { %v536_v29 = vsel %vm221_vm3, %v534_v28, -inf }
 0x393   :  { %537 = vmax.xlane.f32.xlu0 %v536_v29 }
 0x3ae   :  { %v653_v35 = vpop.xlane.xlu2 %652 }
 0x3af   :  { %v650_v32 = vpop.xlane.xlu0 %649 }
 0x3b7   :  { %v493_v13 = vpop.xlane.xlu0 %492 }
 0x3b8   :  { %v527_v36 = vadd.f32 %v525_v23, %v493_v13  ;;  %v132_v23 = vld [vmem:[#allocation11 + $0x10] sm:$0xff] }
 0x3b9   :  { %623 = vmatpush.msra.mxu1 %v132_v23 }
 0x3ba   :  { %v531_v42 = vmul.f32 0.2, %v527_v36  ;;  %vm529_vm14 = vcmp.gt.f32.partialorder %v527_v36, 0.0 }
 0x3bc   :  { %v533_v49 = vsel %vm529_vm14, %v527_v36, %v531_v42  ;;  %v718_v36 = vperm.slane %v1398_v43, 3 }
 0x3bd   :  { %v535_v50 = vadd.f32 %v533_v49, %v1358_v38 }
 0x3bf   :  { %v539_v51 = vsel %vm221_vm3, %v535_v50, -inf }
 0x3c3   :  { %v1417_v30 = vpop.f32.mrf.mxu3 }
 0x3cb   :  { %v1419_v3 = vpop.f32.mrf.mxu3 }
 0x3d3   :  { %v682_v33 = vpop.f32.mrf.mxu3 }
 0x3d4   :  { %v685_v34 = vperm.slane %v682_v33, 0  ;;  %v467_v33 = vpop.f32.mrf.mxu2 }
 0x3d6   :  { %v686_v37 = vadd.f32 %v685_v34, %v650_v32  ;;  %v687_v39 = vadd.f32 %v685_v34, %v653_v35  ;;  %v133_v34 = vld [vmem:[#allocation11 + $0x18] sm:$0xff] }
 0x3d7   :  { %783 = vmatpush.msrb.mxu3 %v133_v34 }
 0x3d8   :  { %v690_v40 = vmul.f32 0.2, %v686_v37  ;;  %v691_v41 = vmul.f32 0.2, %v687_v39  ;;  %vm689_vm12 = vcmp.gt.f32.partialorder %v687_v39, 0.0  ;;  %vm688_vm13 = vcmp.gt.f32.partialorder %v686_v37, 0.0 }
 0x3da   :  { %v693_v44 = vsel %vm689_vm12, %v687_v39, %v691_v41  ;;  %v692_v45 = vsel %vm688_vm13, %v686_v37, %v690_v40 }
 0x3db   :  { %v695_v9 = vadd.f32 %v693_v44, %v1358_v38  ;;  %v694_v46 = vadd.f32 %v692_v45, %v1354_v31 }
 0x3dc   :  { %v470_v35 = vpop.f32.mrf.mxu2 }
 0x3dd   :  { %v699_v47 = vsel %vm221_vm3, %v695_v9, -inf  ;;  %v696_v48 = vsel %vm221_vm3, %v694_v46, -inf }
 0x3de   :  { %700 = vmax.xlane.f32.xlu1 %v699_v47  ;;  %697 = vmax.xlane.f32.xlu2 %v696_v48 }
 0x3e6   :  { %540 = vmax.xlane.f32.xlu2 %v539_v51 }
 0x406   :  { %v538_v52 = vpop.xlane.xlu0 %537 }
 0x407   :  { %v542_v53 = vsub.f32 %v534_v28, %v538_v52 }
 0x409   :  { %v544_v54 = vmul.f32 1.442695, %v542_v53 }
 0x40b   :  { %1010 = vpow2.f32 %v544_v54 }
 0x411   :  { %v1011_v55 = vpop.eup %1010 }
 0x412   :  { %v548_v11 = vsel %vm221_vm3, %v1011_v55, 0.0 }
 0x413   :  { %549 = vadd.xlane.f32.xlu2 %v548_v11 }
 0x451   :  { %v698_v56 = vpop.xlane.xlu2 %697  ;;  %v701_v57 = vpop.xlane.xlu1 %700 }
 0x452   :  { %v702_v58 = vsub.f32 %v694_v46, %v698_v56  ;;  %v703_v59 = vsub.f32 %v695_v9, %v701_v57 }
 0x454   :  { %v704_v60 = vmul.f32 1.442695, %v702_v58  ;;  %v706_v61 = vmul.f32 1.442695, %v703_v59  ;;  %v468_v58 = vadd.f32 %v467_v33, %v1417_v30 }
 0x456   :  { %1012 = vpow2.f32 %v704_v60  ;;  %v984_v60 = vld [vmem:[%s1481_s8] ss:$0 sm:$0xff] }
 0x457   :  { %1014 = vpow2.f32 %v706_v61 }
 0x459   :  { %v541_v62 = vpop.xlane.xlu2 %540 }
 0x45a   :  { %v543_v63 = vsub.f32 %v535_v50, %v541_v62 }
 0x45c   :  { %v1013_v0 = vpop.eup %1012  ;;  %v546_v1 = vmul.f32 1.442695, %v543_v63 }
 0x45d   :  { %v1015_v2 = vpop.eup %1014  ;;  %v708_v4 = vsel %vm221_vm3, %v1013_v0, 0.0 }
 0x45e   :  { %1016 = vpow2.f32 %v546_v1  ;;  %709 = vadd.xlane.f32.xlu1 %v708_v4  ;;  %v711_v5 = vsel %vm221_vm3, %v1015_v2, 0.0  ;;  %v471_v1 = vadd.f32 %v470_v35, %v1419_v3  ;;  %v805_v3 = vld [vmem:[%s1480_s7] sm:$0x1] }
 0x45f   :  { %712 = vadd.xlane.f32.xlu0 %v711_v5 }
 0x464   :  { %v1017_v6 = vpop.eup %1016 }
 0x465   :  { %v551_v7 = vsel %vm221_vm3, %v1017_v6, 0.0 }
 0x466   :  { %552 = vadd.xlane.f32.xlu1 %v551_v7 }
 0x486   :  { %v550_v8 = vpop.xlane.xlu2 %549 }
 0x487   :  { %1018 = vrcp.f32 %v550_v8 }
 0x48d   :  { %v1019_v10 = vpop.eup %1018 }
 0x48e   :  { %v556_v12 = vmul.f32 %v1019_v10, %v1011_v55 }
 0x490   :  { %948 = vmatmul.msk.f32.vlgmr.msra.gmra.mxu0 %vm221_vm3, %v556_v12 }
 0x4d1   :  { %v710_v14 = vpop.xlane.xlu1 %709 }
 0x4d2   :  { %1020 = vrcp.f32 %v710_v14  ;;  %v713_v15 = vpop.xlane.xlu0 %712 }
 0x4d3   :  { %1022 = vrcp.f32 %v713_v15 }
 0x4d8   :  { %v1021_v16 = vpop.eup %1020 }
 0x4d9   :  { %v716_v17 = vmul.f32 %v1021_v16, %v1013_v0  ;;  %v553_v18 = vpop.xlane.xlu1 %552  ;;  %v1023_v19 = vpop.eup %1022 }
 0x4da   :  { %1024 = vrcp.f32 %v553_v18  ;;  %v717_v22 = vmul.f32 %v1023_v19, %v1015_v2 }
 0x4db   :  { %957 = vmatmul.msk.f32.vlgmr.msrb.gmra.mxu2 %vm221_vm3, %v716_v17 }
 0x4e0   :  { %v1025_v20 = vpop.eup %1024 }
 0x4e1   :  { %v557_v21 = vmul.f32 %v1025_v20, %v1017_v6 }
 0x4e3   :  { %949 = vmatmul.msk.f32.gmra.mxu0 %vm221_vm3, %v557_v21  ;;  %958 = vmatmul.msk.f32.gmra.mxu2 %vm221_vm3, %v717_v22 }
 0x50d   :  { %v584_v25 = vpop.f32.mrf.mxu0 }
 0x50e   :  { %v585_v26 = vadd.f32 %v584_v25, %v558_v24 }
 0x510   :  { %v592_v27 = vmin.f32 %v585_v26, 0.0  ;;  %vm590_vm15 = vcmp.gt.f32.partialorder %v585_v26, 0.0 }
 0x512   :  { %v594_v28 = vmul.f32 1.442695, %v592_v27 }
 0x514   :  { %1026 = vpow2.f32 %v594_v28 }
 0x51a   :  { %v1027_v29 = vpop.eup %1026 }
 0x51b   :  { %v950_v32 = vadd.f32 -1.0, %v1027_v29 }
 0x51d   :  { %v600_v13 = vsel %vm590_vm15, %v585_v26, %v950_v32 }
 0x51e   :  { %952 = vmatmul.msk.f32.vlgmr.msra.gmra.mxu1 %vm174_vm1, %v600_v13 }
 0x55e   :  { %v744_v37 = vpop.f32.mrf.mxu2 }
 0x55f   :  { %v745_v39 = vadd.f32 %v744_v37, %v718_v36 }
 0x560   :  { %v587_v40 = vpop.f32.mrf.mxu0 }
 0x561   :  { %v752_v41 = vmin.f32 %v745_v39, 0.0  ;;  %v588_v42 = vadd.f32 %v587_v40, %v558_v24  ;;  %vm750_vm2 = vcmp.gt.f32.partialorder %v745_v39, 0.0 }
 0x563   :  { %v754_v44 = vmul.f32 1.442695, %v752_v41  ;;  %v593_v45 = vmin.f32 %v588_v42, 0.0  ;;  %vm591_vm4 = vcmp.gt.f32.partialorder %v588_v42, 0.0  ;;  %v985_v41 = vld [vmem:[%s1482_s9] ss:$0 sm:$0xff] }
 0x565   :  { %1028 = vpow2.f32 %v754_v44  ;;  %v596_v9 = vmul.f32 1.442695, %v593_v45 }
 0x566   :  { %v747_v46 = vpop.f32.mrf.mxu2 }
 0x567   :  { %1030 = vpow2.f32 %v596_v9  ;;  %v748_v47 = vadd.f32 %v747_v46, %v718_v36 }
 0x569   :  { %v753_v48 = vmin.f32 %v748_v47, 0.0  ;;  %vm751_vm5 = vcmp.gt.f32.partialorder %v748_v47, 0.0 }
 0x56b   :  { %v1029_v49 = vpop.eup %1028  ;;  %v756_v50 = vmul.f32 1.442695, %v753_v48 }
 0x56c   :  { %v959_v51 = vadd.f32 -1.0, %v1029_v49 }
 0x56d   :  { %v1031_v52 = vpop.eup %1030  ;;  %1032 = vpow2.f32 %v756_v50 }
 0x56e   :  { %v760_v43 = vsel %vm750_vm2, %v745_v39, %v959_v51  ;;  %v951_v53 = vadd.f32 -1.0, %v1031_v52 }
 0x56f   :  { %961 = vmatmul.msk.f32.vlgmr.msrb.gmra.mxu3 %vm174_vm1, %v760_v43 }
 0x570   :  { %v601_v54 = vsel %vm591_vm4, %v588_v42, %v951_v53 }
 0x571   :  { %953 = vmatmul.msk.f32.gmra.mxu1 %vm174_vm1, %v601_v54 }
 0x573   :  { %v1033_v55 = vpop.eup %1032 }
 0x574   :  { %v960_v11 = vadd.f32 -1.0, %v1033_v55 }
 0x576   :  { %v761_v56 = vsel %vm751_vm5, %v748_v47, %v960_v11 }
 0x577   :  { %962 = vmatmul.msk.f32.gmra.mxu3 %vm174_vm1, %v761_v56 }
 0x59b   :  { %v625_v57 = vpop.f32.mrf.mxu1 }
 0x59c   :  { %v631_v59 = vadd.f32 %v625_v57, %v468_v58 }
 0x5ee   :  { %v628_v0 = vpop.f32.mrf.mxu1 }
 0x5ef   :  { %v632_v4 = vadd.f32 %v628_v0, %v471_v1 }
 0x5f2   :  { %v785_v61 = vpop.f32.mrf.mxu3 }
 0x5f3   :  { %v791_v62 = vadd.f32 %v785_v61, %v631_v59 }
 0x5f5   :  { %v797_v63 = vmul.f32 %v984_v60, %v791_v62 }
 0x5f7   :  { %v799_v2 = vsel %vm141_vm0, %v797_v63, 0.0 }
 0x5f8   :  { %800 = vadd.xlane.f32.xlu0 %v799_v2 }
 0x5fa   :  { %v788_v5 = vpop.f32.mrf.mxu3 }
 0x5fb   :  { %v792_v6 = vadd.f32 %v788_v5, %v632_v4 }
 0x5fd   :  { %963 = vmatpush.xpose.msk.msrb.mxu0 %vm141_vm0, %v792_v6  ;;  %892 = vmatpush.msrb.mxu1 %v792_v6  ;;  %v798_v30 = vmul.f32 %v984_v60, %v792_v6 }
 0x5ff   :  { %893 = vmatpush.msrb.mxu1 %v791_v62  ;;  %v802_v7 = vsel %vm141_vm0, %v798_v30, 0.0 }
 0x600   :  { %803 = vadd.xlane.f32.xlu2 %v802_v7 }
 0x601   :  { %964 = vmatpush.xpose.msk.msrb.mxu0 %vm141_vm0, %v791_v62 }
 0x604   :  { %965 = vmatmul.msk.f32.vlgmr.msrb.gmra.mxu0 %vm141_vm0, %v805_v3 }
 0x66b   :  { %v801_v12 = vpop.xlane.xlu0 %800 }
 0x673   :  { %v804_v14 = vpop.xlane.xlu2 %803 }
 0x681   :  { %v832_v8 = vpop.f32.mrf.mxu0 }
 0x682   :  { %v835_v10 = vperm.slane %v832_v8, 0 }
 0x684   :  { %v836_v15 = vadd.f32 %v835_v10, %v801_v12  ;;  %v837_v16 = vadd.f32 %v835_v10, %v804_v14 }
 0x686   :  { %v840_v17 = vmul.f32 0.2, %v836_v15  ;;  %v841_v18 = vmul.f32 0.2, %v837_v16  ;;  %vm838_vm1 = vcmp.gt.f32.partialorder %v836_v15, 0.0  ;;  %vm839_vm6 = vcmp.gt.f32.partialorder %v837_v16, 0.0 }
 0x688   :  { %v842_v19 = vsel %vm838_vm1, %v836_v15, %v840_v17  ;;  %v843_v20 = vsel %vm839_vm6, %v837_v16, %v841_v18 }
 0x689   :  { %v844_v21 = vadd.f32 %v842_v19, %v1354_v31  ;;  %v845_v22 = vadd.f32 %v843_v20, %v1358_v38 }
 0x68b   :  { %v846_v23 = vsel %vm221_vm3, %v844_v21, -inf  ;;  %v849_v24 = vsel %vm221_vm3, %v845_v22, -inf }
 0x68c   :  { %847 = vmax.xlane.f32.xlu1 %v846_v23  ;;  %850 = vmax.xlane.f32.xlu0 %v849_v24 }
 0x6ff   :  { %v848_v25 = vpop.xlane.xlu1 %847  ;;  %v851_v26 = vpop.xlane.xlu0 %850 }
 0x700   :  { %v852_v27 = vsub.f32 %v844_v21, %v848_v25  ;;  %v853_v28 = vsub.f32 %v845_v22, %v851_v26 }
 0x702   :  { %v854_v29 = vmul.f32 1.442695, %v852_v27  ;;  %v856_v32 = vmul.f32 1.442695, %v853_v28 }
 0x704   :  { %1034 = vpow2.f32 %v854_v29 }
 0x705   :  { %1036 = vpow2.f32 %v856_v32 }
 0x70a   :  { %v1035_v13 = vpop.eup %1034 }
 0x70b   :  { %v1037_v33 = vpop.eup %1036  ;;  %v858_v31 = vsel %vm221_vm3, %v1035_v13, 0.0 }
 0x70c   :  { %859 = vadd.xlane.f32.xlu2 %v858_v31  ;;  %v861_v38 = vsel %vm221_vm3, %v1037_v33, 0.0 }
 0x70d   :  { %862 = vadd.xlane.f32.xlu1 %v861_v38 }
 0x77f   :  { %v860_v34 = vpop.xlane.xlu2 %859 }
 0x780   :  { %1038 = vrcp.f32 %v860_v34  ;;  %v863_v35 = vpop.xlane.xlu1 %862 }
 0x781   :  { %1040 = vrcp.f32 %v863_v35 }
 0x786   :  { %v1039_v36 = vpop.eup %1038 }
 0x787   :  { %v866_v37 = vmul.f32 %v1039_v36, %v1035_v13  ;;  %v1041_v39 = vpop.eup %1040 }
 0x788   :  { %v867_v40 = vmul.f32 %v1041_v39, %v1037_v33 }
 0x789   :  { %966 = vmatmul.msk.f32.vlgmr.msrb.gmra.mxu1 %vm221_vm3, %v866_v37 }
 0x791   :  { %967 = vmatmul.msk.f32.gmra.mxu1 %vm221_vm3, %v867_v40 }
 0x806   :  { %v895_v42 = vpop.f32.mrf.mxu1 }
 0x807   :  { %v896_v44 = vadd.f32 %v985_v41, %v895_v42 }
 0x809   :  { %901 = vst.msk [vmem:[#allocation13] sm:$0xff] %vm141_vm0, %v896_v44 }
 0x80e   :  { %v898_v45 = vpop.f32.mrf.mxu1 }
 0x80f   :  { %v899_v9 = vadd.f32 %v985_v41, %v898_v45 }
 0x811   :  { %902 = vst.msk [vmem:[#allocation13 + $0x8] sm:$0xff] %vm141_vm0, %v899_v9 }
 0x812   :  { %915 = dma.vmem_to_hbm [thread:$0]  %s908_s30, 256, %s910_s13, [#allocation4], %s1221_s21, %s1221_s21, %s1222_s22  }
 0x813   :  { %1218 = dma.done.wait [#allocation4], 256  }
 0x814   :  { %1219 = vsyncadd [#allocation4], 4294967040 }
 0x815   :  { %920 = vsyncpa [#allocation3], 1 }
 0x816   :  { %921 = vsyncpa [#allocation6], 1 }
 0x817   :  { %922 = vsyncpa [#allocation9], 1 }
 0x818   :  { %923 = vsyncpa [#allocation12], 1 }
 0x819   :  { %924 = vsyncpa [#allocation4], 1 }

</bundles_post_ra>
